<compile_context>
chip_gen: v7x
topology: tpu7x:2x2x1
jax: 0.10.0
libtpu: 0.0.40
codegen_flags: <defaults>
</compile_context>

<pallas_src>
import jax
import jax.numpy as jnp
from jax.experimental import pallas as pl
from jax.experimental.pallas import tpu as pltpu


def mlp_kernel(x_ref, w1_ref, b1_ref, w2_ref, b2_ref, o_ref):
    # In-kernel bf16 cast of x (VPU work, hidden under the MXU dot).
    x = x_ref[...].astype(jnp.bfloat16)
    # hidden = relu(x @ W1 + b1): bf16 MXU operands, f32 accumulate, f32 bias.
    h = jnp.dot(x, w1_ref[...], preferred_element_type=jnp.float32)
    h = jnp.maximum(h + b1_ref[...], 0.0)            # b1 is [1, Hp], broadcasts
    # out = h @ W2 + b2: re-feed the MXU in bf16, keep the f32 accumulate.
    out = jnp.dot(h.astype(jnp.bfloat16), w2_ref[...],
                  preferred_element_type=jnp.float32)
    o_ref[...] = out + b2_ref[...]                   # b2 is [1, O]; f32 store


def _round_up(n, m):
    return pl.cdiv(n, m) * m


def prepare_params(w1, b1, w2, b2):
    """One-time (init-time) parameter prep: pad hidden dim to a multiple of
    128 (exact — zero weights/bias) and cast MXU operands to bf16.

    w1: [F, H], b1: [H], w2: [H, O], b2: [O] (transposed vs. torch weights).
    """
    F, H = w1.shape
    O = w2.shape[1]
    Hp = _round_up(H, 128)
    w1_p = jnp.pad(w1, ((0, 0), (0, Hp - H))).astype(jnp.bfloat16)   # [F, Hp]
    b1_p = jnp.pad(b1, (0, Hp - H)).reshape(1, Hp).astype(jnp.float32)
    w2_p = jnp.pad(w2, ((0, Hp - H), (0, 0))).astype(jnp.bfloat16)   # [Hp, O]
    b2_p = b2.reshape(1, O).astype(jnp.float32)
    return w1_p, b1_p, w2_p, b2_p


def net_forward(x, w1_p, b1_p, w2_p, b2_p, *, tb=512):
    """Pallas-fused MLP forward.

    x: [B, F] float32; params from prepare_params(). Returns [B, O] float32.
    """
    B, F = x.shape
    Hp = w1_p.shape[1]
    O = w2_p.shape[1]

    # Batch tile: multiple of 8 sublanes, never larger than the padded batch.
    B8 = _round_up(B, 8)
    tb = min(_round_up(tb, 8), B8)
    if B8 >= 16:
        # Ensure >= 2 grid steps so the "parallel" batch axis can shard across
        # v7x's two TensorCores (no effect on single-TC v5e/v6e).
        tb = min(tb, _round_up(pl.cdiv(B8, 2), 8))
    Bp = _round_up(B8, tb)

    # Only touch x when the batch actually needs padding (padded rows compute
    # garbage relu(b1)@W2+b2 and are sliced off below).
    x_p = x if Bp == B else jnp.pad(x, ((0, Bp - B), (0, 0)))

    resident = dict(pipeline_mode=pl.Buffered(1))    # constant index_map => 1 buffer

    out = pl.pallas_call(
        mlp_kernel,
        out_shape=jax.ShapeDtypeStruct((Bp, O), jnp.float32),
        grid=(Bp // tb,),
        in_specs=[
            pl.BlockSpec((tb, F), lambda i: (i, 0)),              # x: streamed over B
            pl.BlockSpec((F, Hp), lambda i: (0, 0), **resident),  # W1: resident
            pl.BlockSpec((1, Hp), lambda i: (0, 0), **resident),  # b1: resident
            pl.BlockSpec((Hp, O), lambda i: (0, 0), **resident),  # W2: resident
            pl.BlockSpec((1, O), lambda i: (0, 0), **resident),   # b2: resident
        ],
        out_specs=pl.BlockSpec((tb, O), lambda i: (i, 0)),        # full-width O block
        compiler_params=pltpu.CompilerParams(
            dimension_semantics=("parallel",),
        ),
    )(x_p, w1_p, b1_p, w2_p, b2_p)

    return out if Bp == B else out[:B]


def reference_forward_f32(x, w1, b1, w2, b2):
    h = jnp.maximum(x @ w1 + b1, 0.0)
    return h @ w2 + b2


def reference_forward_bf16(x, w1, b1, w2, b2):
    # Numerics-matched reference (same bf16 operands / f32 accumulation).
    xb = x.astype(jnp.bfloat16)
    w1b = w1.astype(jnp.bfloat16)
    w2b = w2.astype(jnp.bfloat16)
    h = jnp.dot(xb, w1b, preferred_element_type=jnp.float32) + b1
    h = jnp.maximum(h, 0.0)
    return jnp.dot(h.astype(jnp.bfloat16), w2b,
                   preferred_element_type=jnp.float32) + b2


if __name__ == "__main__":
    # Small shapes consistent with Net(n_feature, n_hidden, n_output):
    # Parkinson-style classifier, 22 features -> 32 hidden -> 2 outputs.
    B, F, H, O = 8, 22, 32, 2

    key = jax.random.PRNGKey(0)
    kx, k1, kb1, k2, kb2 = jax.random.split(key, 5)

    x = jax.random.normal(kx, (B, F), dtype=jnp.float32)
    # Deterministic parameter init (Linear-like scaling), stored transposed.
    w1 = jax.random.normal(k1, (F, H), dtype=jnp.float32) * (1.0 / jnp.sqrt(F))
    b1 = jax.random.normal(kb1, (H,), dtype=jnp.float32) * 0.01
    w2 = jax.random.normal(k2, (H, O), dtype=jnp.float32) * (1.0 / jnp.sqrt(H))
    b2 = jax.random.normal(kb2, (O,), dtype=jnp.float32) * 0.01

    # One-time parameter prep (pad/cast hoisted out of the per-forward path).
    params = prepare_params(w1, b1, w2, b2)

    out = jax.block_until_ready(net_forward(x, *params))
    assert out.shape == (B, O)

    # Tight check vs. a numerics-matched (bf16-operand) reference ...
    ref_bf16 = reference_forward_bf16(x, w1, b1, w2, b2)
    assert jnp.allclose(out, ref_bf16, atol=1e-3, rtol=1e-3), "mismatch vs bf16 reference"
    # ... and a loose check vs. the pure-f32 reference (bf16 rounding budget).
    ref_f32 = reference_forward_f32(x, w1, b1, w2, b2)
    assert jnp.allclose(out, ref_f32, atol=5e-2, rtol=5e-2), "mismatch vs f32 reference"

    print("KERNEL_OK")
</pallas_src>

<mosaic_0001>
module attributes {stable_mosaic.version = 11 : i64} {
  func.func @mlp_kernel(%arg0: i32, %arg1: memref<8x22xf32, #tpu.memory_space<vmem>>, %arg2: memref<22x128xbf16, #tpu.memory_space<vmem>>, %arg3: memref<1x128xf32, #tpu.memory_space<vmem>>, %arg4: memref<128x2xbf16, #tpu.memory_space<vmem>>, %arg5: memref<1x2xf32, #tpu.memory_space<vmem>>, %arg6: memref<8x2xf32, #tpu.memory_space<vmem>>) attributes {dimension_semantics = [#tpu.dimension_semantics<parallel>], iteration_bounds = array<i64: 1>, scalar_prefetch = 0 : i64, scratch_operands = 0 : i64, tpu.core_type = #tpu.core_type<tc>, window_params = [{transform_indices = @transform_0, window_bounds = array<i64: 8, 22>}, {pipeline_mode = #tpu.pipeline_mode<synchronous>, transform_indices = @transform_1, window_bounds = array<i64: 22, 128>}, {pipeline_mode = #tpu.pipeline_mode<synchronous>, transform_indices = @transform_2, window_bounds = array<i64: 1, 128>}, {pipeline_mode = #tpu.pipeline_mode<synchronous>, transform_indices = @transform_3, window_bounds = array<i64: 128, 2>}, {pipeline_mode = #tpu.pipeline_mode<synchronous>, transform_indices = @transform_4, window_bounds = array<i64: 1, 2>}, {transform_indices = @transform_5, window_bounds = array<i64: 8, 2>}]} {
    %c0 = arith.constant 0 : index
    %c0_0 = arith.constant 0 : index
    %0 = vector.load %arg1[%c0, %c0_0] : memref<8x22xf32, #tpu.memory_space<vmem>>, vector<8x22xf32>
    %1 = arith.truncf %0 : vector<8x22xf32> to vector<8x22xbf16>
    %c0_1 = arith.constant 0 : index
    %c0_2 = arith.constant 0 : index
    %2 = vector.load %arg2[%c0_1, %c0_2] : memref<22x128xbf16, #tpu.memory_space<vmem>>, vector<22x128xbf16>
    %cst = arith.constant dense<0.000000e+00> : vector<8x128xf32>
    %3 = tpu.matmul %1, %2, %cst {dimension_numbers = #tpu.dot_dimension_numbers<[1], [0], [0], [1], [0, 0, 1, 1], [], []>} : vector<8x22xbf16>, vector<22x128xbf16>, vector<8x128xf32> -> vector<8x128xf32>
    %c0_3 = arith.constant 0 : index
    %c0_4 = arith.constant 0 : index
    %4 = vector.load %arg3[%c0_3, %c0_4] : memref<1x128xf32, #tpu.memory_space<vmem>>, vector<1x128xf32>
    %5 = vector.broadcast %4 : vector<1x128xf32> to vector<8x128xf32>
    %6 = arith.addf %3, %5 : vector<8x128xf32>
    %cst_5 = arith.constant 0.000000e+00 : f32
    %7 = vector.broadcast %cst_5 : f32 to vector<8x128xf32>
    %8 = arith.maximumf %6, %7 : vector<8x128xf32>
    %9 = arith.truncf %8 : vector<8x128xf32> to vector<8x128xbf16>
    %c0_6 = arith.constant 0 : index
    %c0_7 = arith.constant 0 : index
    %10 = vector.load %arg4[%c0_6, %c0_7] : memref<128x2xbf16, #tpu.memory_space<vmem>>, vector<128x2xbf16>
    %cst_8 = arith.constant dense<0.000000e+00> : vector<8x2xf32>
    %11 = tpu.matmul %9, %10, %cst_8 {dimension_numbers = #tpu.dot_dimension_numbers<[1], [0], [0], [1], [0, 0, 1, 1], [], []>} : vector<8x128xbf16>, vector<128x2xbf16>, vector<8x2xf32> -> vector<8x2xf32>
    %c0_9 = arith.constant 0 : index
    %c0_10 = arith.constant 0 : index
    %12 = vector.load %arg5[%c0_9, %c0_10] : memref<1x2xf32, #tpu.memory_space<vmem>>, vector<1x2xf32>
    %13 = vector.broadcast %12 : vector<1x2xf32> to vector<8x2xf32>
    %14 = arith.addf %11, %13 : vector<8x2xf32>
    %c0_11 = arith.constant 0 : index
    %c0_12 = arith.constant 0 : index
    %15 = vector.load %arg6[%c0_11, %c0_12] : memref<8x2xf32, #tpu.memory_space<vmem>>, vector<8x2xf32>
    tpu.vector_store %arg6[%c0_11, %c0_12], %14 {strides = array<i32>} : memref<8x2xf32, #tpu.memory_space<vmem>>, vector<8x2xf32>,
    return
  }
  func.func @transform_0(%arg0: i32) -> (i32, i32) {
    %c0_i32 = arith.constant 0 : i32
    %c0_i32_0 = arith.constant 0 : i32
    return %arg0, %c0_i32 : i32, i32
  }
  func.func @transform_1(%arg0: i32) -> (i32, i32) {
    %c0_i32 = arith.constant 0 : i32
    %c0_i32_0 = arith.constant 0 : i32
    %c0_i32_1 = arith.constant 0 : i32
    return %c0_i32, %c0_i32_0 : i32, i32
  }
  func.func @transform_2(%arg0: i32) -> (i32, i32) {
    %c0_i32 = arith.constant 0 : i32
    %c0_i32_0 = arith.constant 0 : i32
    %c0_i32_1 = arith.constant 0 : i32
    return %c0_i32, %c0_i32_0 : i32, i32
  }
  func.func @transform_3(%arg0: i32) -> (i32, i32) {
    %c0_i32 = arith.constant 0 : i32
    %c0_i32_0 = arith.constant 0 : i32
    %c0_i32_1 = arith.constant 0 : i32
    return %c0_i32, %c0_i32_0 : i32, i32
  }
  func.func @transform_4(%arg0: i32) -> (i32, i32) {
    %c0_i32 = arith.constant 0 : i32
    %c0_i32_0 = arith.constant 0 : i32
    %c0_i32_1 = arith.constant 0 : i32
    return %c0_i32, %c0_i32_0 : i32, i32
  }
  func.func @transform_5(%arg0: i32) -> (i32, i32) {
    %c0_i32 = arith.constant 0 : i32
    %c0_i32_0 = arith.constant 0 : i32
    return %arg0, %c0_i32 : i32, i32
  }
}

</mosaic_0001>

<bundles_post_ra>
// kernel: tpu_custom_call.1
= control target key start
LH: loop header
LB: loop body
LE: loop exit
PB: predicated region body
PF: predicated region fallthrough
CT: control target
= control target key end

     0   :  { %v274_v0 = vmov 0.0   ;;  %vm46_vm0 = vcmask 1042432   ;;  %vm275_vm1 = vmmov 0   ;;  %vm42_vm2 = vcmask 179200   ;;  %s348_s1 = inlined_call_operand.vmem [shape: bf16[22,128], index: 1, kind: input, shape index: {}]   ;;  %s349_s0 = inlined_call_operand.vmem [shape: f32[8,22], index: 0, kind: input, shape index: {}]   ;;  %s350_s3 = inlined_call_operand.vmem [shape: bf16[128,2], index: 3, kind: input, shape index: {}]   ;;  %s351_s2 = inlined_call_operand.vmem [shape: f32[1,128], index: 2, kind: input, shape index: {}]   ;;  %s352_s4 = inlined_call_operand.vmem [shape: f32[1,2], index: 4, kind: input, shape index: {}]   ;;  %s353_s5 = inlined_call_operand.vmem [shape: f32[8,2], index: 5, kind: output, shape index: {}]  }
   0x1   :  { %234 = vmatprep.subr.bf16.mxu0 %v274_v0  ;;  %v264_v1 = vld [vmem:[%s348_s1] sm:$0xff]   ;;  %238 = vmatprep.mubr.msk.bf16.mxu0 %vm275_vm1, %v274_v0  ;;  %v265_v2 = vld [vmem:[%s348_s1 + $0x8] ss:$0 sps:$4 sm:$0x77]   ;;  %v268_v8 = vld [vmem:[%s350_s3 + $0x10] sm:$0xff]   ;;  %vm203_vm3 = vcmask 15360  }
   0x2   :  { %v21_v3 = vld [vmem:[%s349_s0] sm:$0xff]  ;;  %242 = vmatprep.subr.bf16.mxu1 %v274_v0  ;;  %258 = vmatprep.mubr.msk.bf16.mxu1 %vm275_vm1, %v274_v0  ;;  %v48_v5 = vsel %vm46_vm0, %v265_v2, 0  ;;  %v267_v6 = vld [vmem:[%s350_s3 + $0x8] sm:$0xff]   ;;  %v269_v9 = vld [vmem:[%s350_s3 + $0x18] sm:$0xff]  }
   0x3   :  { %235 = vmatpush3.bf16.msra.mxu0 %v264_v1  ;;  %v266_v4 = vld [vmem:[%s350_s3] sm:$0xff]   ;;  %v22_v7 = vpack.c.bf16 %v21_v3, %v21_v3  ;;  %v271_v11 = vld [vmem:[%s350_s3 + $0x28] sm:$0xff]   ;;  %v272_v12 = vld [vmem:[%s350_s3 + $0x30] sm:$0xff]  }
   0x4   :  { %236 = vmatprep.subr.bf16.mxu0 %v274_v0  ;;  %243 = vmatpush3.bf16.msra.mxu1 %v266_v4  ;;  %v270_v10 = vld [vmem:[%s350_s3 + $0x20] sm:$0xff]   ;;  %v273_v13 = vld [vmem:[%s350_s3 + $0x38] sm:$0xff]  }
   0x5   :  { %244 = vmatprep.subr.bf16.mxu1 %v274_v0  ;;  %v209_v14 = vld [vmem:[%s351_s2] ss:$0 sm:$0xff] }
   0x6   :  { %v213_v22 = vld [vmem:[%s352_s4] ss:$0 sm:$0xff] }
   0x7   :  { %237 = vmatpush3.bf16.msra.mxu0 %v48_v5 }
   0x8   :  { %245 = vmatpush3.bf16.msra.mxu1 %v267_v6 }
   0x9   :  { %246 = vmatprep.subr.bf16.mxu1 %v274_v0 }
   0xa   :  { %239 = vmatmul.mubr.msk.bf16.vlgmr.msra.gmra.mrb[0].mxu0 %vm42_vm2, %v22_v7 }
   0xc   :  { %247 = vmatpush3.bf16.msra.mxu1 %v268_v8 }
   0xd   :  { %248 = vmatprep.subr.bf16.mxu1 %v274_v0 }
  0x10   :  { %249 = vmatpush3.bf16.msra.mxu1 %v269_v9 }
  0x11   :  { %250 = vmatprep.subr.bf16.mxu1 %v274_v0 }
  0x14   :  { %251 = vmatpush3.bf16.msra.mxu1 %v270_v10 }
  0x15   :  { %252 = vmatprep.subr.bf16.mxu1 %v274_v0 }
  0x18   :  { %253 = vmatpush3.bf16.msra.mxu1 %v271_v11 }
  0x19   :  { %254 = vmatprep.subr.bf16.mxu1 %v274_v0 }
  0x1c   :  { %255 = vmatpush3.bf16.msra.mxu1 %v272_v12 }
  0x1d   :  { %256 = vmatprep.subr.bf16.mxu1 %v274_v0 }
  0x20   :  { %257 = vmatpush3.bf16.msra.mxu1 %v273_v13 }
  0xdd   :  { %v84_v15 = vpop.f32.mrb[0].mxu0 }
  0xde   :  { %v85_v16 = vadd.f32 %v209_v14, %v84_v15  ;;  %v240_v17 = vpop.f32.mrb[1].mxu0 }
  0xdf   :  { %v87_v18 = vpop.f32.mrb[2].mxu0 }
  0xe0   :  { %v90_v19 = vmax.f32 %v85_v16, 0.0  ;;  %v241_v20 = vpop.f32.mrb[3].mxu0 }
  0xe2   :  { %v91_v21 = vpack.c.bf16 %v90_v19, %v90_v19 }
  0xe4   :  { %259 = vmatmul.mubr.bf16.vlgmr.msra.gmra.mrb[0].mxu1 %v91_v21 }
 0x1b7   :  { %v197_v23 = vpop.f32.mrb[0].mxu1 }
 0x1b8   :  { %v198_v24 = vadd.f32 %v213_v22, %v197_v23  ;;  %v260_v25 = vpop.f32.mrb[1].mxu1 }
 0x1b9   :  { %v200_v26 = vpop.f32.mrb[2].mxu1 }
 0x1ba   :  { %204 = vst.msk [vmem:[%s353_s5] sm:$0xff] %vm203_vm3, %v198_v24  ;;  %v261_v27 = vpop.f32.mrb[3].mxu1 }

</bundles_post_ra>
